<compile_context>
chip_gen: v5e
topology: v5e:2x2
jax: 0.10.0
libtpu: 0.0.40
codegen_flags: <defaults>
</compile_context>

<pallas_src>
import math

import jax
import jax.numpy as jnp
import numpy as np
from jax.experimental import pallas as pl
from jax.experimental.pallas import tpu as pltpu

LANE = 128


def _build_pe(max_seq_length: int, model_dim: int, dtype=jnp.float32) -> jnp.ndarray:
    """Positional-encoding table, identical to the torch __init__ loop.

    Built once (model init) at the model dtype so the per-call path does no
    dtype conversion.
    """
    assert model_dim % 2 == 0, "model_dim must be even (matches the PyTorch loop)"
    pos = np.arange(max_seq_length, dtype=np.float64)[:, None]       # (S, 1)
    i_even = np.arange(0, model_dim, 2, dtype=np.float64)[None, :]   # (1, D/2)
    pe = np.zeros((max_seq_length, model_dim), dtype=np.float32)
    pe[:, 0::2] = np.sin(pos / 10000.0 ** (i_even / model_dim))
    # NOTE: the cosine exponent is (i+1)/model_dim, matching the quoted
    # PyTorch loop (differs from the canonical shared-div_term formulation).
    pe[:, 1::2] = np.cos(pos / 10000.0 ** ((i_even + 1.0) / model_dim))
    return jnp.asarray(pe, dtype=dtype)


def _pos_enc_kernel(x_ref, pe_ref, o_ref):
    # x_ref / pe_ref / o_ref: (TS, TD) — batch dim squeezed out.  Pure lane-
    # dense VPU add; no per-step broadcast.
    o_ref[...] = x_ref[...] + pe_ref[...]


def positional_encoding(x: jnp.ndarray, pe: jnp.ndarray) -> jnp.ndarray:
    """x: (B, S, D); pe: (max_seq_length, D). Returns x + pe[None, :S, :]."""
    B, S, D = x.shape
    itemsize = np.dtype(x.dtype).itemsize
    # pe should already be at the model dtype (built in _build_pe); astype is
    # then a no-op and the slice is cheap.
    pe_s = pe[:S, :].astype(x.dtype)

    # ---- lane-dense layout: if D is not a multiple of 128, fold `fold`
    # consecutive sequence rows into the lane dim so stores are unmasked.
    # If S is not a multiple of `fold`, pad with zero rows and slice after.
    if D % LANE == 0:
        fold = 1
    else:
        fold = math.lcm(D, LANE) // D            # <= 128
    S_pad = ((S + fold - 1) // fold) * fold
    if S_pad != S:
        x = jnp.pad(x, ((0, 0), (0, S_pad - S), (0, 0)))
        pe_s = jnp.pad(pe_s, ((0, S_pad - S), (0, 0)))
    S_r, D_r = S_pad // fold, D * fold           # D_r is a multiple of 128
    x_r = x.reshape(B, S_r, D_r)
    pe_r = pe_s.reshape(S_r, D_r)

    # ---- tiling.  Native sublane tile is dtype dependent: 8 rows for 32-bit,
    # 16 for bf16, 32 for int8/fp8 (packed sublanes).
    sub_mult = 8 * max(1, 4 // itemsize)
    tile_budget = 4 * 1024 * 1024                # ~4 MiB per tile
    row_bytes = D_r * itemsize
    max_rows = tile_budget // max(row_bytes, 1)
    if max_rows >= sub_mult:
        # Full (folded) model dim per block; tile the sequence axis.
        TD = D_r
        TS = S_r if S_r <= max_rows else (max_rows // sub_mult) * sub_mult
    else:
        # Very wide rows: tile the lane axis too so minimal blocks stay small
        # (keeps v7x's 64 MiB physical VMEM safe).
        TS = min(S_r, sub_mult)
        lane_budget = tile_budget // max(TS * itemsize, 1)
        TD = min(D_r, max(LANE, (lane_budget // LANE) * LANE))
    n_seq_tiles = pl.cdiv(S_r, TS)
    n_d_tiles = pl.cdiv(D_r, TD)

    # Guarantee >= 2 steps on the parallel axes for large single-tile inputs
    # so v7x's two TensorCores both get work (no-op on 1-TC v5e/v6e).
    if (n_seq_tiles == 1 and n_d_tiles == 1
            and S_r >= 2 * sub_mult and S_r * row_bytes > (1 << 20)):
        TS = max(sub_mult, (((S_r + 1) // 2) + sub_mult - 1) // sub_mult * sub_mult)
        n_seq_tiles = pl.cdiv(S_r, TS)

    # Grid order: seq-tile / d-tile outer ("parallel" -> megacore sharding),
    # batch innermost ("arbitrary" -> guaranteed iteration order).  The pe
    # block index does not depend on b, so the pe tile stays resident across
    # the batch loop instead of being re-fetched per batch element.
    out_r = pl.pallas_call(
        _pos_enc_kernel,
        out_shape=jax.ShapeDtypeStruct((B, S_r, D_r), x.dtype),
        grid_spec=pltpu.PrefetchScalarGridSpec(
            num_scalar_prefetch=0,
            grid=(n_seq_tiles, n_d_tiles, B),
            in_specs=[
                # one (TS, TD) slab of one batch element per grid step
                pl.BlockSpec((pl.Squeezed(), TS, TD), lambda s, d, b: (b, s, d)),
                # pe tile, constant across the (innermost) batch grid axis
                pl.BlockSpec((TS, TD), lambda s, d, b: (s, d)),
            ],
            out_specs=pl.BlockSpec((pl.Squeezed(), TS, TD), lambda s, d, b: (b, s, d)),
        ),
        compiler_params=pltpu.CompilerParams(
            dimension_semantics=("parallel", "parallel", "arbitrary"),
            vmem_limit_bytes=48 * 1024 * 1024,
        ),
    )(x_r, pe_r)

    out = out_r.reshape(B, S_pad, D)
    if S_pad != S:
        out = out[:, :S, :]
    return out


if __name__ == "__main__":
    # Small shapes consistent with the module's forward.
    batch, seq_len, model_dim, max_seq_length = 2, 8, 32, 16

    key = jax.random.PRNGKey(0)
    x = jax.random.normal(key, (batch, seq_len, model_dim), dtype=jnp.float32)
    pe = _build_pe(max_seq_length, model_dim)

    out = jax.block_until_ready(positional_encoding(x, pe))
    ref = x + pe[None, :seq_len, :]
    assert out.shape == x.shape
    np.testing.assert_allclose(np.asarray(out), np.asarray(ref), rtol=1e-6, atol=1e-6)

    # Already-lane-dense path (D % 128 == 0).
    x2 = jax.random.normal(jax.random.PRNGKey(1), (2, 16, 128), dtype=jnp.float32)
    pe2 = _build_pe(16, 128)
    out2 = jax.block_until_ready(positional_encoding(x2, pe2))
    np.testing.assert_allclose(np.asarray(out2), np.asarray(x2 + pe2[None, :16, :]),
                               rtol=1e-6, atol=1e-6)

    # Narrow-D with S not a multiple of the lane fold (exercises pad + slice).
    x3 = jax.random.normal(jax.random.PRNGKey(2), (2, 6, 32), dtype=jnp.float32)
    pe3 = _build_pe(16, 32)
    out3 = jax.block_until_ready(positional_encoding(x3, pe3))
    np.testing.assert_allclose(np.asarray(out3), np.asarray(x3 + pe3[None, :6, :]),
                               rtol=1e-6, atol=1e-6)

    # bf16 path (dtype-aware sublane rounding; pe built at the model dtype).
    x4 = jax.random.normal(jax.random.PRNGKey(3), (2, 16, 128), dtype=jnp.bfloat16)
    pe4 = _build_pe(16, 128, dtype=jnp.bfloat16)
    out4 = jax.block_until_ready(positional_encoding(x4, pe4))
    ref4 = (x4 + pe4[None, :16, :]).astype(jnp.float32)
    np.testing.assert_allclose(np.asarray(out4.astype(jnp.float32)), np.asarray(ref4),
                               rtol=2e-2, atol=2e-2)

    print("KERNEL_OK")
</pallas_src>

<mosaic_0001>
module attributes {stable_mosaic.version = 11 : i64} {
  func.func @_pos_enc_kernel(%arg0: i32, %arg1: i32, %arg2: i32, %arg3: memref<1x2x128xf32, #tpu.memory_space<vmem>>, %arg4: memref<2x128xf32, #tpu.memory_space<vmem>>, %arg5: memref<1x2x128xf32, #tpu.memory_space<vmem>>) attributes {dimension_semantics = [#tpu.dimension_semantics<parallel>, #tpu.dimension_semantics<parallel>, #tpu.dimension_semantics<arbitrary>], iteration_bounds = array<i64: 1, 1, 2>, scalar_prefetch = 0 : i64, scratch_operands = 0 : i64, tpu.core_type = #tpu.core_type<tc>, window_params = [{transform_indices = @transform_0, window_bounds = array<i64: 1, 2, 128>}, {transform_indices = @transform_1, window_bounds = array<i64: 2, 128>}, {transform_indices = @transform_2, window_bounds = array<i64: 1, 2, 128>}]} {
    %c0 = arith.constant 0 : index
    %c0_0 = arith.constant 0 : index
    %c0_1 = arith.constant 0 : index
    %0 = vector.load %arg3[%c0, %c0_0, %c0_1] : memref<1x2x128xf32, #tpu.memory_space<vmem>>, vector<1x2x128xf32>
    %1 = vector.shape_cast %0 : vector<1x2x128xf32> to vector<2x128xf32>
    %c0_2 = arith.constant 0 : index
    %c0_3 = arith.constant 0 : index
    %2 = vector.load %arg4[%c0_2, %c0_3] : memref<2x128xf32, #tpu.memory_space<vmem>>, vector<2x128xf32>
    %3 = arith.addf %1, %2 : vector<2x128xf32>
    %c0_4 = arith.constant 0 : index
    %c0_5 = arith.constant 0 : index
    %c0_6 = arith.constant 0 : index
    %4 = vector.load %arg5[%c0_4, %c0_5, %c0_6] : memref<1x2x128xf32, #tpu.memory_space<vmem>>, vector<1x2x128xf32>
    %5 = vector.shape_cast %4 : vector<1x2x128xf32> to vector<2x128xf32>
    %6 = vector.shape_cast %3 : vector<2x128xf32> to vector<1x2x128xf32>
    tpu.vector_store %arg5[%c0_4, %c0_5, %c0_6], %6 {strides = array<i32>} : memref<1x2x128xf32, #tpu.memory_space<vmem>>, vector<1x2x128xf32>,
    return
  }
  func.func @transform_0(%arg0: i32, %arg1: i32, %arg2: i32) -> (i32, i32, i32) {
    %c0_i32 = arith.constant 0 : i32
    return %arg2, %arg0, %arg1 : i32, i32, i32
  }
  func.func @transform_1(%arg0: i32, %arg1: i32, %arg2: i32) -> (i32, i32) {
    %c0_i32 = arith.constant 0 : i32
    return %arg0, %arg1 : i32, i32
  }
  func.func @transform_2(%arg0: i32, %arg1: i32, %arg2: i32) -> (i32, i32, i32) {
    %c0_i32 = arith.constant 0 : i32
    return %arg2, %arg0, %arg1 : i32, i32, i32
  }
}

</mosaic_0001>

<bundles_post_ra>
// kernel: tpu_custom_call.1
= control target key start
LH: loop header
LB: loop body
LE: loop exit
PB: predicated region body
PF: predicated region fallthrough
CT: control target
= control target key end

     0   :  { %7 = vsyncpa [#allocation3], 0  ;;  %s736_s0 = inlined_call_operand.hbm [shape: f32[2,2,128], index: 0, kind: input, shape index: {}]   ;;  %s737_s1 = inlined_call_operand.hbm [shape: f32[2,128], index: 1, kind: input, shape index: {}]   ;;  %s738_s2 = inlined_call_operand.hbm [shape: f32[2,2,128], index: 2, kind: output, shape index: {}]  }
   0x1   :  { %9 = vsyncpa [#allocation3 + $0x1], 0 }
   0x2   :  { %10 = vsyncpa [#allocation6], 0 }
   0x3   :  { %11 = vsyncpa [#allocation4], 0 }
   0x4   :  { %13 = vsyncpa [#allocation4 + $0x1], 0  ;;  %s587_s9 = smov 0   ;;  %s589_s10 = smov 0  }
   0x5   :  { %s591_s11 = smov 0   ;;  %s593_s12 = smov 0  }
   0x6   :  { %s595_s13 = smov 0   ;;  %s597_s14 = smov 0  }
   0x7 LB: > { %s335_s15 = sadd.s32 4294967295, %s569_s14   ;;  %s336_s16 = sadd.s32 4294967294, %s569_s14   ;;  %s569_s14 = sphi %s597_s14, %s19_s14   ;;  %s565_s13 = sphi %s595_s13, %s750_s13   ;;  %s561_s12 = sphi %s593_s12, %s749_s12   ;;  %s557_s11 = sphi %s591_s11, %s748_s11   ;;  %s553_s10 = sphi %s589_s10, %s747_s10   ;;  %s549_s9 = sphi %s587_s9, %s746_s9  }
   0x8   : > { %p62_p0 = scmp.ne.s32.totalorder %s553_s10, %s549_s9  ;;  %p621_p1 = scmp.eq.s32.totalorder %s335_s15, 0 }
   0x9   : > { %p625_p2 = scmp.eq.s32.totalorder %s335_s15, 1  ;;  %p124_p3 = scmp.eq.s32.totalorder %s336_s16, 1 }
   0xa   : > { %p631_p4 = por %p621_p1, %p62_p0  ;;  %p337_p5 = scmp.ge.s32.totalorder %s569_s14, 1 }
   0xb   : > { %p636_p6 = por %p124_p3, %p62_p0  ;;  %p131_p7 = scmp.lt.s32.totalorder %s569_s14, 3 }
   0xc   : > { %s146_s23 = sshll.u32 %s737_s1, 4  ;;  %p339_p9 = scmp.ge.s32.totalorder %s569_s14, 2  ;;  %s147_s23 = int_to_ptr.hbm [resolvable:$true] %s146_s23 }
   0xd   : > { %p644_p8 = pnand %p337_p5, %p131_p7  ;;  %s571_s25 = smov [#allocation5]  }
   0xe   : > { %s148_s26 = sshll.u32 %s571_s25, 4  ;;  %s31_s27 = sadd.s32 1, %s565_s13  ;;  %s149_s26 = int_to_ptr.vmem [resolvable:$true] %s148_s26 }
   0xf   : > { %p358_p10 = pneg %p644_p8  ;;  %p32_p12 = scmp.ge.s32.totalorder %s31_s27, 2 }
  0x10   : > { %s49_s28 = sadd.s32 1, %s557_s11  ;;  %p56_p13 = scmp.ne.s32.totalorder %s557_s11, %s553_s10 }
  0x11   : > { %p359_p11 = pnand %p358_p10, %p621_p1  ;;  %p57_p0 = scmp.eq.s32.totalorder %s569_s14, 0 }
  0x12   : > { %s752_s27 = smov (%p32_p12, %s31_s27), 0  ;;  %p666_p5 = por %p625_p2, %p56_p13 }
  0x13   : > { %361 = dma.hbm_to_vmem [thread:$0]  (!%p359_p11), %s147_s23, 32, %s149_s26, [#allocation6]  }
  0x14   : > { %p660_p3 = por %p57_p0, %p56_p13  ;;  %s42_s3 = ssub.s32 %s565_s13, %s752_s27 }
  0x15   : > { %p371_p7 = scmp.lt.s32.totalorder %s569_s14, 2  ;;  %p47_p10 = scmp.eq.s32.totalorder %s42_s3, 0 }
  0x16   : > { %s159_s4 = sand.u32 1, %s557_s11   ;;  %s341_s7 = sshll.u32 %s565_s13, 1 }
  0x17   : > { %s340_s5 = sshll.u32 %s159_s4, 1  ;;  %s169_s16 = scalar_lea.hbm %s736_s0, %s341_s7 }
  0x18   : > { %s675_s6 = scalar_select %p47_p10, %s557_s11, %s49_s28  }
  0x19   : > { %s163_s21 = scalar_lea.vmem [#allocation2], %s340_s5  ;;  %s171_s18 = sshll.u32 %s169_s16, 4  ;;  %s172_s18 = int_to_ptr.hbm [resolvable:$true] %s171_s18 }
  0x1a   : > { %s173_s22 = sshll.u32 %s163_s21, 4  ;;  %p363_p2 = pnand %p371_p7, %p660_p3  ;;  %s174_s22 = int_to_ptr.vmem [resolvable:$true] %s173_s22 }
  0x1b   : > { %s160_s23 = scalar_lea.sflag [#allocation3], %s159_s4  ;;  %182 = sbr.rel (%p644_p8) target bundleno = 50 (0x32), region = 28 }
  0x1c   : > { %365 = dma.hbm_to_vmem [thread:$0]  (!%p363_p2), %s172_s18, 32, %s174_s22, %s160_s23  }
  0x1d   : > { %s686_s25 = sand.u32 (!%p644_p8), 1, %s553_s10  }
  0x1e   : > { %s343_s26 = sshll.u32 (!%p644_p8), %s686_s25, 1  ;;  %s185_s28 = scalar_lea.sflag (!%p644_p8), [#allocation3], %s686_s25 }
  0x1f   : > { %s188_s3 = scalar_lea.vmem (!%p644_p8), [#allocation2], %s343_s26 }
  0x20   : > { %536 = dma.done.wait (%p631_p4), %s185_s28, 32  }
  0x21   : > { %538 = vsyncadd (%p631_p4), %s185_s28, 4294967264 }
  0x22   : > { %540 = dma.done.wait (%p621_p1), [#allocation6], 32  }
  0x23   : > { %542 = vsyncadd (%p621_p1), [#allocation6], 4294967264  ;;  %s347_s24 = sshll.u32 %s561_s12, 1  ;;  %s214_s7 = scalar_lea.vmem [#allocation7], %s343_s26  ;;  %v215_v0 = vld [vmem:[%s188_s3] sm:$0x3] }
  0x24   : > { %s232_s5 = scalar_lea.hbm %s738_s2, %s347_s24  ;;  %s234_s8 = sshll.u32 %s214_s7, 4  ;;  %v216_v1 = vld [vmem:[#allocation5] sm:$0x3]  ;;  %s235_s8 = int_to_ptr.vmem [resolvable:$true] %s234_s8 }
  0x25   : > { %s236_s15 = sshll.u32 %s232_s5, 4  ;;  %v217_v2 = vadd.f32 %v216_v1, %v215_v0  ;;  %s220_s19 = scalar_lea.sflag [#allocation4], %s686_s25  ;;  %s237_s15 = int_to_ptr.hbm [resolvable:$true] %s236_s15 }
  0x26   : > { %s497_s17 = sshra.s32 %s237_s15, 4  ;;  %s503_s22 = scalar_lea.hbm %s738_s2, 4  ;;  %s498_s17 = int_to_ptr.hbm [resolvable:$true] %s497_s17 }
  0x27   : > { %218 = vst [vmem:[%s214_s7] sm:$0x3] %v217_v2  ;;  %s499_s16 = scalar_lea.hbm %s498_s17, 2  ;;  %p504_p11 = scmp.lt.s32.totalorder %s498_s17, %s738_s2 }
  0x28   : > { %p500_p1 = scmp.ne.s32.totalorder %s498_s17, %s499_s16  ;;  %p505_p12 = scmp.lt.s32.totalorder %s503_s22, %s499_s16 }
  0x2a   : > { %p501_p4 = pnand %p500_p1, %p666_p5  ;;  %p506_p13 = por %p505_p12, %p504_p11 }
  0x2c   : > { %p502_p8 = pneg %p501_p4 }
  0x2e   : > { %p507_p0 = pnand %p506_p13, %p502_p8 }
  0x30   : > { %510 = shalt.err (!%p507_p0)
}
  0x31   : > { %356 = dma.vmem_to_hbm [thread:$0]  (%p666_p5), %s235_s8, 32, %s237_s15, %s220_s19  }
  0x32 PF: > { %s248_s25 = sand.u32 1, %s549_s9   ;;  %p367_p3 = pnand %p339_p9, %p636_p6 }
  0x33   : > { %s249_s26 = scalar_lea.sflag [#allocation4], %s248_s25 }
  0x34   : > { %p368_p7 = pneg %p367_p3 }
  0x36   : > { %544 = dma.done.wait (%p368_p7), %s249_s26, 32  }
  0x37   : > { %546 = vsyncadd (%p368_p7), %s249_s26, 4294967264  ;;  %s19_s14 = sadd.s32 1, %s569_s14   ;;  %s746_s9 = smov %s553_s10 }
  0x38   : > { %p16_p10 = scmp.ge.s32.totalorder %s19_s14, 4   ;;  %s747_s10 = smov %s557_s11 }
  0x39   : > { %s748_s11 = smov %s675_s6  ;;  %s749_s12 = smov %s565_s13 }
  0x3a   : > { %s750_s13 = smov %s752_s27  ;;  %18 = sbr.rel (!%p16_p10) target bundleno = 7 (0x7), region = 78 }
  0x3f   :  { %255 = vsyncpa [#allocation3], 1 }
  0x40   :  { %257 = vsyncpa [#allocation3 + $0x1], 1 }
  0x41   :  { %258 = vsyncpa [#allocation6], 1 }
  0x42   :  { %259 = vsyncpa [#allocation4], 1 }
  0x43   :  { %261 = vsyncpa [#allocation4 + $0x1], 1 }

</bundles_post_ra>
